<compile_context>
chip_gen: v7x
topology: tpu7x:2x2x1
jax: 0.10.0
libtpu: 0.0.40
codegen_flags: <defaults>
</compile_context>

<pallas_src>
import functools

import numpy as np
import jax
import jax.numpy as jnp
from jax.experimental import pallas as pl
from jax.experimental.pallas import tpu as pltpu

# kB * NA in kJ/(mol*K)  (== molar gas constant R); replaces openmm.unit.
_KB_NA_KJ_PER_MOL_K = 0.008314462618153241
_EPS = 1e-12


def _round_up(x, m):
    return -(-x // m) * m


# -----------------------------------------------------------------------------
# Small component-triple helpers (trace-time; operate on (rows, TB) blocks)
# -----------------------------------------------------------------------------
def _sub(a, b):
    return tuple(x - y for x, y in zip(a, b))


def _dot3(a, b):
    return a[0] * b[0] + a[1] * b[1] + a[2] * b[2]


def _cross(a, b):
    return (a[1] * b[2] - a[2] * b[1],
            a[2] * b[0] - a[0] * b[2],
            a[0] * b[1] - a[1] * b[0])


def _scale(a, s):
    return tuple(x * s for x in a)


# -----------------------------------------------------------------------------
# Fused Pallas kernel: in-kernel gather+difference (MXU) -> featurization (VPU/EUP)
# -> 4-layer MLP (MXU), batch on the LANE axis.
#   g     : (3*n_pad, TB)  unique particle coords [x-block; y-block; z-block]
#   dmat  : (R, n_pad)     constant +/-1 difference matrix, R = 2*ga + 3*gd + gr
#   w1:(H,D_pad) b1:(H,1)  w2:(H,H) b2:(H,1)  w3:(H,H) b3:(H,1)  w4:(1,H)  (w* bf16)
#   o     : (1, TB)        lane-dense energies (already scaled by kbT)
# -----------------------------------------------------------------------------
def _nnforce_kernel(g_ref, dmat_ref,
                    w1_ref, b1_ref, w2_ref, b2_ref, w3_ref, b3_ref, w4_ref,
                    o_ref, *, n_pad, ga, gd, gr, kbT):
    g = g_ref[...]                          # (3*n_pad, TB) f32
    dm = dmat_ref[...]                      # (R, n_pad)    f32

    # Role gather + pairwise differences fused into one tiny MXU matmul per axis.
    # (All group offsets below are multiples of 8 -> pure vreg placement.)
    dx = jnp.dot(dm, g[0 * n_pad:1 * n_pad, :], preferred_element_type=jnp.float32)
    dy = jnp.dot(dm, g[1 * n_pad:2 * n_pad, :], preferred_element_type=jnp.float32)
    dz = jnp.dot(dm, g[2 * n_pad:3 * n_pad, :], preferred_element_type=jnp.float32)

    def grp(lo, n):
        return (dx[lo:lo + n, :], dy[lo:lo + n, :], dz[lo:lo + n, :])

    # --- angles -> cos(theta)   (cos(arccos(clip(c))) == clip(c)) ------------
    v1 = grp(0, ga)
    v2 = grp(ga, ga)
    cos_ang = _dot3(v1, v2) * jax.lax.rsqrt(
        jnp.maximum(_dot3(v1, v1) * _dot3(v2, v2), _EPS))
    cos_ang = jnp.clip(cos_ang, -1.0, 1.0)                        # (ga, TB)

    # --- dihedrals -> cos(phi), sin(phi)   (cos/sin of atan2(y, x)) ----------
    off = 2 * ga
    b0 = grp(off, gd)
    b1 = grp(off + gd, gd)
    b2 = grp(off + 2 * gd, gd)
    u = _scale(b1, jax.lax.rsqrt(jnp.maximum(_dot3(b1, b1), _EPS)))   # unit b1
    v = _sub(b0, _scale(u, _dot3(b0, u)))
    w = _sub(b2, _scale(u, _dot3(b2, u)))
    x_ = _dot3(v, w)
    y_ = _dot3(_cross(u, v), w)
    inv_r = jax.lax.rsqrt(jnp.maximum(x_ * x_ + y_ * y_, _EPS))
    cos_dih = x_ * inv_r                                           # (gd, TB)
    sin_dih = y_ * inv_r                                           # (gd, TB)

    # --- distances ------------------------------------------------------------
    dvec = grp(2 * ga + 3 * gd, gr)
    dist = jnp.sqrt(_dot3(dvec, dvec))                             # (gr, TB)

    # --- feature slab (D_pad, TB): 8-aligned groups, batch on lanes -----------
    feat = jnp.concatenate([cos_ang, cos_dih, sin_dih, dist], axis=0)

    # --- MLP: 3x tanh(Linear) + bias-free fc4.  bf16 MXU operands, f32 accum,
    #     f32 biases / tanh (safe on v5e, EUP/VPU relief on v6e/v7x).
    h = jnp.tanh(jnp.dot(w1_ref[...], feat.astype(jnp.bfloat16),
                         preferred_element_type=jnp.float32) + b1_ref[...])
    h = jnp.tanh(jnp.dot(w2_ref[...], h.astype(jnp.bfloat16),
                         preferred_element_type=jnp.float32) + b2_ref[...])
    h = jnp.tanh(jnp.dot(w3_ref[...], h.astype(jnp.bfloat16),
                         preferred_element_type=jnp.float32) + b3_ref[...])
    out = jnp.dot(w4_ref[...], h.astype(jnp.bfloat16),
                  preferred_element_type=jnp.float32)              # (1, TB)
    o_ref[...] = (kbT * out).astype(o_ref.dtype)


# -----------------------------------------------------------------------------
# Batch-tile chooser: multiple of 128, capped at 1024, and >= 2 grid steps
# whenever B > 128 so v7x's two TensorCores both get work.
# -----------------------------------------------------------------------------
def _choose_block_b(B, target=1024):
    if B <= 128:
        return 128
    half = -(-B // 2)                       # ceil(B / 2)
    return max(128, min(target, _round_up(half, 128)))


# -----------------------------------------------------------------------------
# Host wrapper: one transpose/pad + one pallas_call over batch tiles.
# -----------------------------------------------------------------------------
@functools.partial(jax.jit, static_argnames=("T", "block_b"))
def nnforce_energy_batched(positions, params, idx_angle, idx_dihedral,
                           idx_distance, *, T, block_b=None):
    """positions: (B, n_particles, 3) float32 -> (B,) potential energies [kJ/mol]."""
    f32 = jnp.float32
    B, N, _ = positions.shape
    na = idx_angle.shape[0]
    nd = idx_dihedral.shape[0]
    nr = idx_distance.shape[0]
    H = params["w1"].shape[0]

    ga, gd, gr = _round_up(na, 8), _round_up(nd, 8), _round_up(nr, 8)
    d_pad = ga + 2 * gd + gr                # padded feature width (32 here)
    n_pad = _round_up(N, 8)

    if block_b is None:
        block_b = _choose_block_b(B)
    nb = -(-B // block_b)
    Bp = nb * block_b
    kbT = _KB_NA_KJ_PER_MOL_K * float(T)

    # Coordinates: (B, N, 3) -> one (3*n_pad, Bp) slab, batch on lanes.
    # No duplicated gather: only the 16 unique particle rows go to the kernel.
    g = jnp.transpose(positions.astype(f32), (2, 1, 0))            # (3, N, B)
    g = jnp.pad(g, ((0, 0), (0, n_pad - N), (0, Bp - B)))
    g = g.reshape(3 * n_pad, Bp)

    # Constant +/-1 difference matrix: (R, n_pad); 8-row-aligned role groups.
    def diff_rows(ip, im, rows):
        d = (jax.nn.one_hot(ip, n_pad, dtype=f32)
             - jax.nn.one_hot(im, n_pad, dtype=f32))                # (n, n_pad)
        return jnp.pad(d, ((0, rows - d.shape[0]), (0, 0)))

    dmat = jnp.concatenate([
        diff_rows(idx_angle[:, 0], idx_angle[:, 1], ga),            # angle v1
        diff_rows(idx_angle[:, 2], idx_angle[:, 1], ga),            # angle v2
        diff_rows(idx_dihedral[:, 0], idx_dihedral[:, 1], gd),      # dih   b0
        diff_rows(idx_dihedral[:, 2], idx_dihedral[:, 1], gd),      # dih   b1
        diff_rows(idx_dihedral[:, 3], idx_dihedral[:, 2], gd),      # dih   b2
        diff_rows(idx_distance[:, 0], idx_distance[:, 1], gr),      # dist  dv
    ], axis=0)                                                      # (R, n_pad)

    # Pad w1's columns to the 8-aligned feature layout (padded cols stay zero),
    # and store the MXU weights as bf16 (biases stay f32).
    cols = np.concatenate([np.arange(na),
                           ga + np.arange(nd),
                           ga + gd + np.arange(nd),
                           ga + 2 * gd + np.arange(nr)])
    w1p = jnp.zeros((H, d_pad), f32).at[:, cols].set(params["w1"].astype(f32))
    w1b = w1p.astype(jnp.bfloat16)
    w2b = params["w2"].astype(jnp.bfloat16)
    w3b = params["w3"].astype(jnp.bfloat16)
    w4b = params["w4"].astype(jnp.bfloat16)
    b1 = params["b1"].astype(f32)
    b2 = params["b2"].astype(f32)
    b3 = params["b3"].astype(f32)

    kernel = functools.partial(_nnforce_kernel, n_pad=n_pad, ga=ga, gd=gd,
                               gr=gr, kbT=kbT)

    coord_spec = pl.BlockSpec((3 * n_pad, block_b), lambda i: (0, i))

    def resident(a):       # same block every grid step -> DMA'd from HBM once
        return pl.BlockSpec(a.shape, lambda i: (0, 0))

    out = pl.pallas_call(
        kernel,
        out_shape=jax.ShapeDtypeStruct((1, Bp), f32),
        grid_spec=pltpu.PrefetchScalarGridSpec(
            num_scalar_prefetch=0,
            grid=(nb,),
            in_specs=[coord_spec, resident(dmat),
                      resident(w1b), resident(b1),
                      resident(w2b), resident(b2),
                      resident(w3b), resident(b3),
                      resident(w4b)],
            out_specs=pl.BlockSpec((1, block_b), lambda i: (0, i)),
        ),
        compiler_params=pltpu.CompilerParams(
            dimension_semantics=("parallel",)),
    )(g, dmat, w1b, b1, w2b, b2, w3b, b3, w4b)

    return out[0, :B]


def nnforce_forward(positions, params, idx_angle, idx_dihedral, idx_distance, T):
    """Original module semantics: positions (n_particles, 3) -> scalar energy."""
    e = nnforce_energy_batched(positions[None], params, idx_angle, idx_dihedral,
                               idx_distance, T=T)
    return e[0]


# -----------------------------------------------------------------------------
# Pure-JAX reference (original torch math: arccos / atan2, f32) for validation.
# -----------------------------------------------------------------------------
def nnforce_reference(positions_b, params, idx_angle, idx_dihedral,
                      idx_distance, T):
    kbT = _KB_NA_KJ_PER_MOL_K * T
    xyz = positions_b                                   # (B, N, 3)

    p0 = xyz[:, idx_angle[:, 0]]
    p1 = xyz[:, idx_angle[:, 1]]
    p2 = xyz[:, idx_angle[:, 2]]
    v1 = p0 - p1
    v2 = p2 - p1
    cosang = jnp.sum(v1 * v2, -1) / (
        jnp.linalg.norm(v1, axis=-1) * jnp.linalg.norm(v2, axis=-1))
    angles = jnp.arccos(jnp.clip(cosang, -1.0, 1.0))

    q0 = xyz[:, idx_dihedral[:, 0]]
    q1 = xyz[:, idx_dihedral[:, 1]]
    q2 = xyz[:, idx_dihedral[:, 2]]
    q3 = xyz[:, idx_dihedral[:, 3]]
    b0 = q0 - q1
    b1 = q2 - q1
    b2 = q3 - q2
    b1n = b1 / jnp.linalg.norm(b1, axis=-1, keepdims=True)
    v = b0 - jnp.sum(b0 * b1n, -1, keepdims=True) * b1n
    w = b2 - jnp.sum(b2 * b1n, -1, keepdims=True) * b1n
    x = jnp.sum(v * w, -1)
    y = jnp.sum(jnp.cross(b1n, v) * w, -1)
    dihedrals = jnp.arctan2(y, x)

    r0 = xyz[:, idx_distance[:, 0]]
    r1 = xyz[:, idx_distance[:, 1]]
    dists = jnp.linalg.norm(r0 - r1, axis=-1)

    feat = jnp.concatenate(
        [jnp.cos(angles), jnp.cos(dihedrals), jnp.sin(dihedrals), dists], axis=-1)
    h = jnp.tanh(feat @ params["w1"].T + params["b1"][:, 0])
    h = jnp.tanh(h @ params["w2"].T + params["b2"][:, 0])
    h = jnp.tanh(h @ params["w3"].T + params["b3"][:, 0])
    out = h @ params["w4"].T                            # (B, 1)
    return kbT * out[:, 0]


# -----------------------------------------------------------------------------
# Deterministic parameter init (PyTorch nn.Linear layout (out, in) and range)
# -----------------------------------------------------------------------------
def init_params(key, d_in, hidden):
    ks = jax.random.split(key, 7)

    def linear(kw, kb, fan_in, fan_out, bias=True):
        bound = float(fan_in) ** -0.5
        w = jax.random.uniform(kw, (fan_out, fan_in), jnp.float32, -bound, bound)
        b = (jax.random.uniform(kb, (fan_out, 1), jnp.float32, -bound, bound)
             if bias else None)
        return w, b

    w1, b1 = linear(ks[0], ks[1], d_in, hidden)
    w2, b2 = linear(ks[2], ks[3], hidden, hidden)
    w3, b3 = linear(ks[4], ks[5], hidden, hidden)
    w4, _ = linear(ks[6], ks[6], hidden, 1, bias=False)   # (1, hidden)
    return {"w1": w1, "b1": b1, "w2": w2, "b2": b2,
            "w3": w3, "b3": b3, "w4": w4}


if __name__ == "__main__":
    n_particles = 16
    hidden_size = 32
    n_angles = 6
    n_dihedrals = 5
    n_distances = 8
    T = 300.0
    batch = 512            # -> block_b=256, grid of 2 "parallel" steps

    key = jax.random.PRNGKey(0)
    k_pos, k_par = jax.random.split(key)

    # Deterministic index tuples (consecutive particles), like bonded terms.
    idx_angle = jnp.stack(
        [jnp.arange(n_angles), jnp.arange(n_angles) + 1, jnp.arange(n_angles) + 2],
        axis=-1).astype(jnp.int32)                                 # (6, 3)
    idx_dihedral = jnp.stack(
        [jnp.arange(n_dihedrals), jnp.arange(n_dihedrals) + 1,
         jnp.arange(n_dihedrals) + 2, jnp.arange(n_dihedrals) + 3],
        axis=-1).astype(jnp.int32)                                 # (5, 4)
    idx_distance = jnp.stack(
        [jnp.arange(n_distances), jnp.arange(n_distances) + 4],
        axis=-1).astype(jnp.int32)                                 # (8, 2)

    d_in = n_angles + 2 * n_dihedrals + n_distances                # 24
    params = init_params(k_par, d_in, hidden_size)

    positions = jax.random.normal(k_pos, (batch, n_particles, 3), jnp.float32)

    energies = nnforce_energy_batched(positions, params, idx_angle, idx_dihedral,
                                      idx_distance, T=T)
    energies = jax.block_until_ready(energies)
    assert energies.shape == (batch,) and energies.dtype == jnp.float32
    assert bool(jnp.all(jnp.isfinite(energies)))

    # Correctness vs. plain-JAX f32 reference of the original torch math.
    ref = jax.block_until_ready(
        nnforce_reference(positions, params, idx_angle, idx_dihedral,
                          idx_distance, T))
    assert bool(jnp.allclose(energies, ref, rtol=5e-2, atol=5e-2)), (
        float(jnp.max(jnp.abs(energies - ref))))

    # Original single-frame semantics: (n_particles, 3) -> scalar.
    e0 = jax.block_until_ready(
        nnforce_forward(positions[0], params, idx_angle, idx_dihedral,
                        idx_distance, T))
    assert e0.shape == () and bool(jnp.isfinite(e0))
    assert bool(jnp.allclose(e0, energies[0], rtol=1e-3, atol=1e-3))

    print("KERNEL_OK")
</pallas_src>

<mosaic_0001>
module attributes {stable_mosaic.version = 11 : i64} {
  func.func @_nnforce_kernel(%arg0: i32, %arg1: memref<48x256xf32, #tpu.memory_space<vmem>>, %arg2: memref<48x16xf32, #tpu.memory_space<vmem>>, %arg3: memref<32x32xbf16, #tpu.memory_space<vmem>>, %arg4: memref<32x1xf32, #tpu.memory_space<vmem>>, %arg5: memref<32x32xbf16, #tpu.memory_space<vmem>>, %arg6: memref<32x1xf32, #tpu.memory_space<vmem>>, %arg7: memref<32x32xbf16, #tpu.memory_space<vmem>>, %arg8: memref<32x1xf32, #tpu.memory_space<vmem>>, %arg9: memref<1x32xbf16, #tpu.memory_space<vmem>>, %arg10: memref<1x256xf32, #tpu.memory_space<vmem>>) attributes {dimension_semantics = [#tpu.dimension_semantics<parallel>], iteration_bounds = array<i64: 2>, scalar_prefetch = 0 : i64, scratch_operands = 0 : i64, tpu.core_type = #tpu.core_type<tc>, window_params = [{transform_indices = @transform_0, window_bounds = array<i64: 48, 256>}, {pipeline_mode = #tpu.pipeline_mode<synchronous>, transform_indices = @transform_1, window_bounds = array<i64: 48, 16>}, {pipeline_mode = #tpu.pipeline_mode<synchronous>, transform_indices = @transform_2, window_bounds = array<i64: 32, 32>}, {pipeline_mode = #tpu.pipeline_mode<synchronous>, transform_indices = @transform_3, window_bounds = array<i64: 32, 1>}, {pipeline_mode = #tpu.pipeline_mode<synchronous>, transform_indices = @transform_4, window_bounds = array<i64: 32, 32>}, {pipeline_mode = #tpu.pipeline_mode<synchronous>, transform_indices = @transform_5, window_bounds = array<i64: 32, 1>}, {pipeline_mode = #tpu.pipeline_mode<synchronous>, transform_indices = @transform_6, window_bounds = array<i64: 32, 32>}, {pipeline_mode = #tpu.pipeline_mode<synchronous>, transform_indices = @transform_7, window_bounds = array<i64: 32, 1>}, {pipeline_mode = #tpu.pipeline_mode<synchronous>, transform_indices = @transform_8, window_bounds = array<i64: 1, 32>}, {transform_indices = @transform_9, window_bounds = array<i64: 1, 256>}]} {
    %c0 = arith.constant 0 : index
    %c0_0 = arith.constant 0 : index
    %0 = vector.load %arg1[%c0, %c0_0] : memref<48x256xf32, #tpu.memory_space<vmem>>, vector<48x256xf32>
    %c0_1 = arith.constant 0 : index
    %c0_2 = arith.constant 0 : index
    %1 = vector.load %arg2[%c0_1, %c0_2] : memref<48x16xf32, #tpu.memory_space<vmem>>, vector<48x16xf32>
    %2 = vector.extract_strided_slice %0 {offsets = [0, 0], sizes = [16, 256], strides = [1, 1]} : vector<48x256xf32> to vector<16x256xf32>
    %cst = arith.constant dense<0.000000e+00> : vector<48x256xf32>
    %3 = tpu.matmul %1, %2, %cst {dimension_numbers = #tpu.dot_dimension_numbers<[1], [0], [0], [1], [0, 0, 1, 1], [], []>} : vector<48x16xf32>, vector<16x256xf32>, vector<48x256xf32> -> vector<48x256xf32>
    %4 = vector.extract_strided_slice %0 {offsets = [16, 0], sizes = [16, 256], strides = [1, 1]} : vector<48x256xf32> to vector<16x256xf32>
    %cst_3 = arith.constant dense<0.000000e+00> : vector<48x256xf32>
    %5 = tpu.matmul %1, %4, %cst_3 {dimension_numbers = #tpu.dot_dimension_numbers<[1], [0], [0], [1], [0, 0, 1, 1], [], []>} : vector<48x16xf32>, vector<16x256xf32>, vector<48x256xf32> -> vector<48x256xf32>
    %6 = vector.extract_strided_slice %0 {offsets = [32, 0], sizes = [16, 256], strides = [1, 1]} : vector<48x256xf32> to vector<16x256xf32>
    %cst_4 = arith.constant dense<0.000000e+00> : vector<48x256xf32>
    %7 = tpu.matmul %1, %6, %cst_4 {dimension_numbers = #tpu.dot_dimension_numbers<[1], [0], [0], [1], [0, 0, 1, 1], [], []>} : vector<48x16xf32>, vector<16x256xf32>, vector<48x256xf32> -> vector<48x256xf32>
    %8 = vector.extract_strided_slice %3 {offsets = [0, 0], sizes = [8, 256], strides = [1, 1]} : vector<48x256xf32> to vector<8x256xf32>
    %9 = vector.extract_strided_slice %5 {offsets = [0, 0], sizes = [8, 256], strides = [1, 1]} : vector<48x256xf32> to vector<8x256xf32>
    %10 = vector.extract_strided_slice %7 {offsets = [0, 0], sizes = [8, 256], strides = [1, 1]} : vector<48x256xf32> to vector<8x256xf32>
    %11 = vector.extract_strided_slice %3 {offsets = [8, 0], sizes = [8, 256], strides = [1, 1]} : vector<48x256xf32> to vector<8x256xf32>
    %12 = vector.extract_strided_slice %5 {offsets = [8, 0], sizes = [8, 256], strides = [1, 1]} : vector<48x256xf32> to vector<8x256xf32>
    %13 = vector.extract_strided_slice %7 {offsets = [8, 0], sizes = [8, 256], strides = [1, 1]} : vector<48x256xf32> to vector<8x256xf32>
    %14 = arith.mulf %8, %11 : vector<8x256xf32>
    %15 = arith.mulf %9, %12 : vector<8x256xf32>
    %16 = arith.addf %14, %15 : vector<8x256xf32>
    %17 = arith.mulf %10, %13 : vector<8x256xf32>
    %18 = arith.addf %16, %17 : vector<8x256xf32>
    %19 = arith.mulf %8, %8 : vector<8x256xf32>
    %20 = arith.mulf %9, %9 : vector<8x256xf32>
    %21 = arith.addf %19, %20 : vector<8x256xf32>
    %22 = arith.mulf %10, %10 : vector<8x256xf32>
    %23 = arith.addf %21, %22 : vector<8x256xf32>
    %24 = arith.mulf %11, %11 : vector<8x256xf32>
    %25 = arith.mulf %12, %12 : vector<8x256xf32>
    %26 = arith.addf %24, %25 : vector<8x256xf32>
    %27 = arith.mulf %13, %13 : vector<8x256xf32>
    %28 = arith.addf %26, %27 : vector<8x256xf32>
    %29 = arith.mulf %23, %28 : vector<8x256xf32>
    %cst_5 = arith.constant 9.99999996E-13 : f32
    %30 = vector.broadcast %cst_5 : f32 to vector<8x256xf32>
    %31 = arith.maximumf %29, %30 : vector<8x256xf32>
    %32 = math.rsqrt %31 : vector<8x256xf32>
    %33 = arith.mulf %18, %32 : vector<8x256xf32>
    %cst_6 = arith.constant -1.000000e+00 : f32
    %cst_7 = arith.constant 1.000000e+00 : f32
    %34 = vector.broadcast %cst_6 : f32 to vector<8x256xf32>
    %35 = arith.maximumf %34, %33 : vector<8x256xf32>
    %36 = vector.broadcast %cst_7 : f32 to vector<8x256xf32>
    %37 = arith.minimumf %36, %35 : vector<8x256xf32>
    %38 = vector.extract_strided_slice %3 {offsets = [16, 0], sizes = [8, 256], strides = [1, 1]} : vector<48x256xf32> to vector<8x256xf32>
    %39 = vector.extract_strided_slice %5 {offsets = [16, 0], sizes = [8, 256], strides = [1, 1]} : vector<48x256xf32> to vector<8x256xf32>
    %40 = vector.extract_strided_slice %7 {offsets = [16, 0], sizes = [8, 256], strides = [1, 1]} : vector<48x256xf32> to vector<8x256xf32>
    %41 = vector.extract_strided_slice %3 {offsets = [24, 0], sizes = [8, 256], strides = [1, 1]} : vector<48x256xf32> to vector<8x256xf32>
    %42 = vector.extract_strided_slice %5 {offsets = [24, 0], sizes = [8, 256], strides = [1, 1]} : vector<48x256xf32> to vector<8x256xf32>
    %43 = vector.extract_strided_slice %7 {offsets = [24, 0], sizes = [8, 256], strides = [1, 1]} : vector<48x256xf32> to vector<8x256xf32>
    %44 = vector.extract_strided_slice %3 {offsets = [32, 0], sizes = [8, 256], strides = [1, 1]} : vector<48x256xf32> to vector<8x256xf32>
    %45 = vector.extract_strided_slice %5 {offsets = [32, 0], sizes = [8, 256], strides = [1, 1]} : vector<48x256xf32> to vector<8x256xf32>
    %46 = vector.extract_strided_slice %7 {offsets = [32, 0], sizes = [8, 256], strides = [1, 1]} : vector<48x256xf32> to vector<8x256xf32>
    %47 = arith.mulf %41, %41 : vector<8x256xf32>
    %48 = arith.mulf %42, %42 : vector<8x256xf32>
    %49 = arith.addf %47, %48 : vector<8x256xf32>
    %50 = arith.mulf %43, %43 : vector<8x256xf32>
    %51 = arith.addf %49, %50 : vector<8x256xf32>
    %cst_8 = arith.constant 9.99999996E-13 : f32
    %52 = vector.broadcast %cst_8 : f32 to vector<8x256xf32>
    %53 = arith.maximumf %51, %52 : vector<8x256xf32>
    %54 = math.rsqrt %53 : vector<8x256xf32>
    %55 = arith.mulf %41, %54 : vector<8x256xf32>
    %56 = arith.mulf %42, %54 : vector<8x256xf32>
    %57 = arith.mulf %43, %54 : vector<8x256xf32>
    %58 = arith.mulf %38, %55 : vector<8x256xf32>
    %59 = arith.mulf %39, %56 : vector<8x256xf32>
    %60 = arith.addf %58, %59 : vector<8x256xf32>
    %61 = arith.mulf %40, %57 : vector<8x256xf32>
    %62 = arith.addf %60, %61 : vector<8x256xf32>
    %63 = arith.mulf %55, %62 : vector<8x256xf32>
    %64 = arith.mulf %56, %62 : vector<8x256xf32>
    %65 = arith.mulf %57, %62 : vector<8x256xf32>
    %66 = arith.subf %38, %63 : vector<8x256xf32>
    %67 = arith.subf %39, %64 : vector<8x256xf32>
    %68 = arith.subf %40, %65 : vector<8x256xf32>
    %69 = arith.mulf %44, %55 : vector<8x256xf32>
    %70 = arith.mulf %45, %56 : vector<8x256xf32>
    %71 = arith.addf %69, %70 : vector<8x256xf32>
    %72 = arith.mulf %46, %57 : vector<8x256xf32>
    %73 = arith.addf %71, %72 : vector<8x256xf32>
    %74 = arith.mulf %55, %73 : vector<8x256xf32>
    %75 = arith.mulf %56, %73 : vector<8x256xf32>
    %76 = arith.mulf %57, %73 : vector<8x256xf32>
    %77 = arith.subf %44, %74 : vector<8x256xf32>
    %78 = arith.subf %45, %75 : vector<8x256xf32>
    %79 = arith.subf %46, %76 : vector<8x256xf32>
    %80 = arith.mulf %66, %77 : vector<8x256xf32>
    %81 = arith.mulf %67, %78 : vector<8x256xf32>
    %82 = arith.addf %80, %81 : vector<8x256xf32>
    %83 = arith.mulf %68, %79 : vector<8x256xf32>
    %84 = arith.addf %82, %83 : vector<8x256xf32>
    %85 = arith.mulf %56, %68 : vector<8x256xf32>
    %86 = arith.mulf %57, %67 : vector<8x256xf32>
    %87 = arith.subf %85, %86 : vector<8x256xf32>
    %88 = arith.mulf %57, %66 : vector<8x256xf32>
    %89 = arith.mulf %55, %68 : vector<8x256xf32>
    %90 = arith.subf %88, %89 : vector<8x256xf32>
    %91 = arith.mulf %55, %67 : vector<8x256xf32>
    %92 = arith.mulf %56, %66 : vector<8x256xf32>
    %93 = arith.subf %91, %92 : vector<8x256xf32>
    %94 = arith.mulf %87, %77 : vector<8x256xf32>
    %95 = arith.mulf %90, %78 : vector<8x256xf32>
    %96 = arith.addf %94, %95 : vector<8x256xf32>
    %97 = arith.mulf %93, %79 : vector<8x256xf32>
    %98 = arith.addf %96, %97 : vector<8x256xf32>
    %99 = arith.mulf %84, %84 : vector<8x256xf32>
    %100 = arith.mulf %98, %98 : vector<8x256xf32>
    %101 = arith.addf %99, %100 : vector<8x256xf32>
    %cst_9 = arith.constant 9.99999996E-13 : f32
    %102 = vector.broadcast %cst_9 : f32 to vector<8x256xf32>
    %103 = arith.maximumf %101, %102 : vector<8x256xf32>
    %104 = math.rsqrt %103 : vector<8x256xf32>
    %105 = arith.mulf %84, %104 : vector<8x256xf32>
    %106 = arith.mulf %98, %104 : vector<8x256xf32>
    %107 = vector.extract_strided_slice %3 {offsets = [40, 0], sizes = [8, 256], strides = [1, 1]} : vector<48x256xf32> to vector<8x256xf32>
    %108 = vector.extract_strided_slice %5 {offsets = [40, 0], sizes = [8, 256], strides = [1, 1]} : vector<48x256xf32> to vector<8x256xf32>
    %109 = vector.extract_strided_slice %7 {offsets = [40, 0], sizes = [8, 256], strides = [1, 1]} : vector<48x256xf32> to vector<8x256xf32>
    %110 = arith.mulf %107, %107 : vector<8x256xf32>
    %111 = arith.mulf %108, %108 : vector<8x256xf32>
    %112 = arith.addf %110, %111 : vector<8x256xf32>
    %113 = arith.mulf %109, %109 : vector<8x256xf32>
    %114 = arith.addf %112, %113 : vector<8x256xf32>
    %115 = math.sqrt %114 : vector<8x256xf32>
    %116 = tpu.concatenate %37, %105, %106, %115 in 0 : vector<8x256xf32>, vector<8x256xf32>, vector<8x256xf32>, vector<8x256xf32> -> vector<32x256xf32>
    %c0_10 = arith.constant 0 : index
    %c0_11 = arith.constant 0 : index
    %117 = vector.load %arg3[%c0_10, %c0_11] : memref<32x32xbf16, #tpu.memory_space<vmem>>, vector<32x32xbf16>
    %118 = arith.truncf %116 : vector<32x256xf32> to vector<32x256xbf16>
    %cst_12 = arith.constant dense<0.000000e+00> : vector<32x256xf32>
    %119 = tpu.matmul %117, %118, %cst_12 {dimension_numbers = #tpu.dot_dimension_numbers<[1], [0], [0], [1], [0, 0, 1, 1], [], []>} : vector<32x32xbf16>, vector<32x256xbf16>, vector<32x256xf32> -> vector<32x256xf32>
    %c0_13 = arith.constant 0 : index
    %c0_14 = arith.constant 0 : index
    %120 = vector.load %arg4[%c0_13, %c0_14] : memref<32x1xf32, #tpu.memory_space<vmem>>, vector<32x1xf32>
    %121 = vector.broadcast %120 : vector<32x1xf32> to vector<32x256xf32>
    %122 = arith.addf %119, %121 : vector<32x256xf32>
    %123 = math.tanh %122 : vector<32x256xf32>
    %c0_15 = arith.constant 0 : index
    %c0_16 = arith.constant 0 : index
    %124 = vector.load %arg5[%c0_15, %c0_16] : memref<32x32xbf16, #tpu.memory_space<vmem>>, vector<32x32xbf16>
    %125 = arith.truncf %123 : vector<32x256xf32> to vector<32x256xbf16>
    %cst_17 = arith.constant dense<0.000000e+00> : vector<32x256xf32>
    %126 = tpu.matmul %124, %125, %cst_17 {dimension_numbers = #tpu.dot_dimension_numbers<[1], [0], [0], [1], [0, 0, 1, 1], [], []>} : vector<32x32xbf16>, vector<32x256xbf16>, vector<32x256xf32> -> vector<32x256xf32>
    %c0_18 = arith.constant 0 : index
    %c0_19 = arith.constant 0 : index
    %127 = vector.load %arg6[%c0_18, %c0_19] : memref<32x1xf32, #tpu.memory_space<vmem>>, vector<32x1xf32>
    %128 = vector.broadcast %127 : vector<32x1xf32> to vector<32x256xf32>
    %129 = arith.addf %126, %128 : vector<32x256xf32>
    %130 = math.tanh %129 : vector<32x256xf32>
    %c0_20 = arith.constant 0 : index
    %c0_21 = arith.constant 0 : index
    %131 = vector.load %arg7[%c0_20, %c0_21] : memref<32x32xbf16, #tpu.memory_space<vmem>>, vector<32x32xbf16>
    %132 = arith.truncf %130 : vector<32x256xf32> to vector<32x256xbf16>
    %cst_22 = arith.constant dense<0.000000e+00> : vector<32x256xf32>
    %133 = tpu.matmul %131, %132, %cst_22 {dimension_numbers = #tpu.dot_dimension_numbers<[1], [0], [0], [1], [0, 0, 1, 1], [], []>} : vector<32x32xbf16>, vector<32x256xbf16>, vector<32x256xf32> -> vector<32x256xf32>
    %c0_23 = arith.constant 0 : index
    %c0_24 = arith.constant 0 : index
    %134 = vector.load %arg8[%c0_23, %c0_24] : memref<32x1xf32, #tpu.memory_space<vmem>>, vector<32x1xf32>
    %135 = vector.broadcast %134 : vector<32x1xf32> to vector<32x256xf32>
    %136 = arith.addf %133, %135 : vector<32x256xf32>
    %137 = math.tanh %136 : vector<32x256xf32>
    %c0_25 = arith.constant 0 : index
    %c0_26 = arith.constant 0 : index
    %138 = vector.load %arg9[%c0_25, %c0_26] : memref<1x32xbf16, #tpu.memory_space<vmem>>, vector<1x32xbf16>
    %139 = arith.truncf %137 : vector<32x256xf32> to vector<32x256xbf16>
    %cst_27 = arith.constant dense<0.000000e+00> : vector<1x256xf32>
    %140 = tpu.matmul %138, %139, %cst_27 {dimension_numbers = #tpu.dot_dimension_numbers<[1], [0], [0], [1], [0, 0, 1, 1], [], []>} : vector<1x32xbf16>, vector<32x256xbf16>, vector<1x256xf32> -> vector<1x256xf32>
    %cst_28 = arith.constant 2.49433875 : f32
    %141 = vector.broadcast %cst_28 : f32 to vector<1x256xf32>
    %142 = arith.mulf %141, %140 : vector<1x256xf32>
    %c0_29 = arith.constant 0 : index
    %c0_30 = arith.constant 0 : index
    %143 = vector.load %arg10[%c0_29, %c0_30] : memref<1x256xf32, #tpu.memory_space<vmem>>, vector<1x256xf32>
    tpu.vector_store %arg10[%c0_29, %c0_30], %142 {strides = array<i32>} : memref<1x256xf32, #tpu.memory_space<vmem>>, vector<1x256xf32>,
    return
  }
  func.func @transform_0(%arg0: i32) -> (i32, i32) {
    %c0_i32 = arith.constant 0 : i32
    %c0_i32_0 = arith.constant 0 : i32
    return %c0_i32, %arg0 : i32, i32
  }
  func.func @transform_1(%arg0: i32) -> (i32, i32) {
    %c0_i32 = arith.constant 0 : i32
    %c0_i32_0 = arith.constant 0 : i32
    %c0_i32_1 = arith.constant 0 : i32
    return %c0_i32, %c0_i32_0 : i32, i32
  }
  func.func @transform_2(%arg0: i32) -> (i32, i32) {
    %c0_i32 = arith.constant 0 : i32
    %c0_i32_0 = arith.constant 0 : i32
    %c0_i32_1 = arith.constant 0 : i32
    return %c0_i32, %c0_i32_0 : i32, i32
  }
  func.func @transform_3(%arg0: i32) -> (i32, i32) {
    %c0_i32 = arith.constant 0 : i32
    %c0_i32_0 = arith.constant 0 : i32
    %c0_i32_1 = arith.constant 0 : i32
    return %c0_i32, %c0_i32_0 : i32, i32
  }
  func.func @transform_4(%arg0: i32) -> (i32, i32) {
    %c0_i32 = arith.constant 0 : i32
    %c0_i32_0 = arith.constant 0 : i32
    %c0_i32_1 = arith.constant 0 : i32
    return %c0_i32, %c0_i32_0 : i32, i32
  }
  func.func @transform_5(%arg0: i32) -> (i32, i32) {
    %c0_i32 = arith.constant 0 : i32
    %c0_i32_0 = arith.constant 0 : i32
    %c0_i32_1 = arith.constant 0 : i32
    return %c0_i32, %c0_i32_0 : i32, i32
  }
  func.func @transform_6(%arg0: i32) -> (i32, i32) {
    %c0_i32 = arith.constant 0 : i32
    %c0_i32_0 = arith.constant 0 : i32
    %c0_i32_1 = arith.constant 0 : i32
    return %c0_i32, %c0_i32_0 : i32, i32
  }
  func.func @transform_7(%arg0: i32) -> (i32, i32) {
    %c0_i32 = arith.constant 0 : i32
    %c0_i32_0 = arith.constant 0 : i32
    %c0_i32_1 = arith.constant 0 : i32
    return %c0_i32, %c0_i32_0 : i32, i32
  }
  func.func @transform_8(%arg0: i32) -> (i32, i32) {
    %c0_i32 = arith.constant 0 : i32
    %c0_i32_0 = arith.constant 0 : i32
    %c0_i32_1 = arith.constant 0 : i32
    return %c0_i32, %c0_i32_0 : i32, i32
  }
  func.func @transform_9(%arg0: i32) -> (i32, i32) {
    %c0_i32 = arith.constant 0 : i32
    %c0_i32_0 = arith.constant 0 : i32
    return %c0_i32, %arg0 : i32, i32
  }
}

</mosaic_0001>

<bundles_post_ra>
// kernel: nnforce_energy_batched.1
= control target key start
LH: loop header
LB: loop body
LE: loop exit
PB: predicated region body
PF: predicated region fallthrough
CT: control target
= control target key end

     0   :  { %14 = vsyncpa [#allocation4], 0  ;;  %s2020_s0 = inlined_call_operand.vmem [shape: f32[48,512], index: 0, kind: input, shape index: {}]   ;;  %s2021_s1 = inlined_call_operand.vmem [shape: f32[48,16], index: 1, kind: input, shape index: {}]   ;;  %s2022_s2 = inlined_call_operand.vmem [shape: bf16[32,32], index: 2, kind: input, shape index: {}]   ;;  %s2023_s3 = inlined_call_operand.vmem [shape: f32[32,1], index: 3, kind: input, shape index: {}]   ;;  %s2024_s4 = inlined_call_operand.vmem [shape: bf16[32,32], index: 4, kind: input, shape index: {}]   ;;  %s2025_s5 = inlined_call_operand.vmem [shape: f32[32,1], index: 5, kind: input, shape index: {}]   ;;  %s2026_s6 = inlined_call_operand.vmem [shape: bf16[32,32], index: 6, kind: input, shape index: {}]   ;;  %s2027_s7 = inlined_call_operand.vmem [shape: f32[32,1], index: 7, kind: input, shape index: {}]   ;;  %s2028_s8 = inlined_call_operand.vmem [shape: bf16[1,32], index: 8, kind: input, shape index: {}]   ;;  %s2029_s9 = inlined_call_operand.hbm [shape: f32[1,512], index: 9, kind: output, shape index: {}]  }
   0x1   :  { %16 = vsyncpa [#allocation4 + $0x1], 0  ;;  %s1673_s30 = smov 0   ;;  %s1675_s10 = smov 0  }
   0x2   :  { %s1677_s11 = smov 0   ;;  %s1679_s12 = smov 0  }
   0x3 LB: > { %s1379_s13 = sadd.s32 4294967295, %s1617_s12   ;;  %s1380_s14 = sadd.s32 4294967294, %s1617_s12   ;;  %s1617_s12 = sphi %s1679_s12, %s2035_s12   ;;  %s1613_s11 = sphi %s1677_s11, %s2034_s11   ;;  %s1609_s10 = sphi %s1675_s10, %s2033_s10   ;;  %s1605_s30 = sphi %s1673_s30, %s2032_s30  }
   0x4   : > { %s1696_s15 = sadd.s32 1, %s1617_s12   ;;  %s29_s16 = sadd.s32 1, %s1613_s11 }
   0x5   : > { %s26_s17 = ssub.s32 %s1617_s12, %s1696_s15  ;;  %p36_p0 = scmp.ne.s32.totalorder %s1613_s11, %s1609_s10 }
   0x6   : > { %p27_p1 = scmp.eq.s32.totalorder %s26_s17, 0  ;;  %p37_p2 = scmp.eq.s32.totalorder %s1617_s12, 0 }
   0x7   : > { %p234_p3 = scmp.eq.s32.totalorder %s1379_s13, 1  ;;  %p239_p4 = scmp.ne.s32.totalorder %s1609_s10, %s1605_s30 }
   0x8   : > { %s1709_s18 = scalar_select %p27_p1, %s1613_s11, %s29_s16  }
   0x9   : > { %p38_p5 = por %p37_p2, %p36_p0  ;;  %p1711_p6 = por %p234_p3, %p36_p0 }
   0xa   : > { %p240_p7 = scmp.eq.s32.totalorder %s1380_s14, 1  ;;  %p1382_p9 = scmp.ge.s32.totalorder %s1617_s12, 2 }
   0xc   : > { %p1715_p8 = por %p240_p7, %p239_p4  ;;  %280 = sbr.rel (%p1382_p9) target bundleno = 29 (0x1d), region = 48 }
  0x13   : > { %283 = sbr.rel (!%p38_p5) target bundleno = 29 (0x1d), region = 52  ;;  %s285_s21 = sand.u32 (%p38_p5), 1, %s1613_s11  }
  0x14   : > { %s1425_s22 = sshll.u32 (%p38_p5), %s1617_s12, 4  ;;  %s1439_s23 = smul.u32 (%p38_p5), 96, %s285_s21 }
  0x15   : > { %s290_s26 = scalar_lea.vmem (%p38_p5), %s2020_s0, %s1425_s22 }
  0x16   : > { %v303_v0 = vld [vmem:[%s290_s26] sm:$0xff] (%p38_p5)  ;;  %v305_v1 = vld [vmem:[%s290_s26 + $0x8] sm:$0xff] (%p38_p5)  ;;  %s287_s27 = scalar_lea.vmem (%p38_p5), [#allocation2], %s1439_s23 }
  0x17   : > { %v307_v2 = vld [vmem:[%s290_s26 + $0x20] sm:$0xff] (%p38_p5)  ;;  %v309_v3 = vld [vmem:[%s290_s26 + $0x28] sm:$0xff] (%p38_p5)  ;;  %304 = vst [vmem:[%s287_s27] sm:$0xff] (%p38_p5), %v303_v0  ;;  %306 = vst [vmem:[%s287_s27 + $0x8] sm:$0xff] (%p38_p5), %v305_v1 }
  0x18   : > { %v311_v4 = vld [vmem:[%s290_s26 + $0x40] sm:$0xff] (%p38_p5)  ;;  %v313_v5 = vld [vmem:[%s290_s26 + $0x48] sm:$0xff] (%p38_p5)  ;;  %308 = vst [vmem:[%s287_s27 + $0x10] sm:$0xff] (%p38_p5), %v307_v2  ;;  %310 = vst [vmem:[%s287_s27 + $0x18] sm:$0xff] (%p38_p5), %v309_v3 }
  0x19   : > { %312 = vst [vmem:[%s287_s27 + $0x20] sm:$0xff] (%p38_p5), %v311_v4  ;;  %314 = vst [vmem:[%s287_s27 + $0x28] sm:$0xff] (%p38_p5), %v313_v5  ;;  %v315_v6 = vld [vmem:[%s290_s26 + $0x60] sm:$0xff] (%p38_p5)  ;;  %v317_v7 = vld [vmem:[%s290_s26 + $0x68] sm:$0xff] (%p38_p5) }
  0x1a   : > { %v319_v8 = vld [vmem:[%s290_s26 + $0x80] sm:$0xff]  ;;  %316 = vst [vmem:[%s287_s27 + $0x30] sm:$0xff] %v315_v6  ;;  %318 = vst [vmem:[%s287_s27 + $0x38] sm:$0xff] %v317_v7  ;;  %v321_v9 = vld [vmem:[%s290_s26 + $0x88] sm:$0xff] }
  0x1b   : > { %320 = vst [vmem:[%s287_s27 + $0x40] sm:$0xff] %v319_v8  ;;  %v323_v10 = vld [vmem:[%s290_s26 + $0xa0] sm:$0xff]  ;;  %v325_v11 = vld [vmem:[%s290_s26 + $0xa8] sm:$0xff]  ;;  %322 = vst [vmem:[%s287_s27 + $0x48] sm:$0xff] %v321_v9 }
  0x1c   : > { %324 = vst [vmem:[%s287_s27 + $0x50] sm:$0xff] %v323_v10  ;;  %326 = vst [vmem:[%s287_s27 + $0x58] sm:$0xff] %v325_v11 }
  0x1d PF: > { %p1385_p10 = scmp.ge.s32.totalorder %s1617_s12, 1  ;;  %p331_p11 = scmp.lt.s32.totalorder %s1617_s12, 3 }
  0x1f   : > { %p332_p12 = pnand %p1385_p10, %p331_p11 }
  0x20   : > { %s1730_s28 = sand.u32 (!%p332_p12), 1, %s1609_s10   ;;  %v1619_v12 = vmov (!%p332_p12), 0.0   ;;  %v388_v24 = vld [vmem:[%s2021_s1] sm:$0xff] (!%p332_p12)  ;;  %vm394_vm0 = vcmask (!%p332_p12), 130048   ;;  %v389_v32 = vld [vmem:[%s2021_s1 + $0x8] sm:$0xff] (!%p332_p12)  ;;  %v390_v33 = vld [vmem:[%s2021_s1 + $0x10] sm:$0xff] (!%p332_p12) }
  0x21   : > { %335 = sbr.rel (%p332_p12) target bundleno = 1328 (0x530), region = 75  ;;  %477 = vmatprep.mubr.f32.mxu0 (!%p332_p12), %v1619_v12  ;;  %578 = vmatprep.mubr.f32.mxu1 (!%p332_p12), %v1619_v12  ;;  %v391_v34 = vld [vmem:[%s2021_s1 + $0x18] sm:$0xff] (!%p332_p12)  ;;  %v392_v35 = vld [vmem:[%s2021_s1 + $0x20] sm:$0xff] (!%p332_p12)  ;;  %v393_v36 = vld [vmem:[%s2021_s1 + $0x28] sm:$0xff] (!%p332_p12)  ;;  %v1620_v37 = vmov (!%p332_p12), 0   ;;  %vm940_vm5 = vcmask (!%p332_p12), 261120  }
  0x22   : > { %s1440_s29 = smul.u32 (!%p332_p12), 96, %s1730_s28  ;;  %1483 = vset.pattern.permute.xlu0 (!%p332_p12), %v1620_v37  ;;  %1484 = vset.pattern.permute.xlu1 (!%p332_p12), %v1620_v37  ;;  %v906_v38 = vld [vmem:[%s2023_s3] sm:$0xff] (!%p332_p12)  ;;  %v908_v39 = vld [vmem:[%s2023_s3 + $0x10] sm:$0xff] (!%p332_p12)  ;;  %v907_v40 = vld [vmem:[%s2023_s3 + $0x8] sm:$0xff] (!%p332_p12)  ;;  %s1386_s25 = sshll.u32 (!%p332_p12), %s1730_s28, 1 }
  0x23   : > { %912 = vperm.xlu0 (!%p332_p12), %1483, %v906_v38   ;;  %922 = vperm.xlu1 (!%p332_p12), %1484, %v908_v39   ;;  %v909_v41 = vld [vmem:[%s2023_s3 + $0x18] sm:$0xff] (!%p332_p12)  ;;  %v1016_v42 = vld [vmem:[%s2025_s5] sm:$0xff] (!%p332_p12)  ;;  %v1017_v43 = vld [vmem:[%s2025_s5 + $0x8] sm:$0xff] (!%p332_p12)  ;;  %s1426_s26 = sshll.u32 (!%p332_p12), %s1379_s13, 5  ;;  %s372_s27 = scalar_lea.vmem (!%p332_p12), [#allocation3], %s1386_s25 }
  0x24   : > { %s340_s14 = scalar_lea.vmem (!%p332_p12), [#allocation2], %s1440_s29  ;;  %v1018_v52 = vld [vmem:[%s2025_s5 + $0x10] sm:$0xff] (!%p332_p12)  ;;  %v1019_v55 = vld [vmem:[%s2025_s5 + $0x18] sm:$0xff] (!%p332_p12)  ;;  %v1125_v4 = vld [vmem:[%s2027_s7] sm:$0xff] (!%p332_p12)  ;;  %s1315_s29 = sshll.u32 (!%p332_p12), %s372_s27, 4  ;;  %s1978_s29 = int_to_ptr.vmem [resolvable:$true] %s1315_s29 }
  0x25   : > { %v377_v13 = vld [vmem:[%s340_s14 + $0x8] sm:$0xff] (!%p332_p12)  ;;  %v379_v14 = vld [vmem:[%s340_s14 + $0x18] sm:$0xff] (!%p332_p12)  ;;  %v376_v18 = vld [vmem:[%s340_s14] sm:$0xff] (!%p332_p12)  ;;  %s1976_s17 = scalar_lea.hbm (!%p332_p12), %s2029_s9, %s1426_s26  ;;  %s1301_s21 = scalar_lea.sflag (!%p332_p12), [#allocation4], %s1730_s28 }
  0x26   : > { %v381_v15 = vld [vmem:[%s340_s14 + $0x28] sm:$0xff] (!%p332_p12)  ;;  %v1427_v16 = vpack.c.bf16 (!%p332_p12), %v379_v14, %v377_v13  ;;  %v383_v17 = vld [vmem:[%s340_s14 + $0x38] sm:$0xff] (!%p332_p12)  ;;  %v378_v19 = vld [vmem:[%s340_s14 + $0x10] sm:$0xff] (!%p332_p12)  ;;  %s1555_s22 = scalar_lea.vmem (!%p332_p12), %s1978_s29, 32  ;;  %s1622_s13 = smov (!%p332_p12), [#allocation3]  }
  0x27   : > { %v1431_v20 = vpack.c.bf16 (!%p332_p12), %v383_v17, %v381_v15  ;;  %v1429_v21 = vpack.c.bf16 (!%p332_p12), %v378_v19, %v376_v18  ;;  %v380_v22 = vld [vmem:[%s340_s14 + $0x20] sm:$0xff] (!%p332_p12)  ;;  %v382_v23 = vld [vmem:[%s340_s14 + $0x30] sm:$0xff] (!%p332_p12)  ;;  %v385_v25 = vld [vmem:[%s340_s14 + $0x48] sm:$0xff] (!%p332_p12)  ;;  %917 = vperm.xlu0 (!%p332_p12), %1483, %v907_v40   ;;  %927 = vperm.xlu1 (!%p332_p12), %1484, %v909_v41   ;;  %p1556_p13 = scmp.ne.s32.totalorder (!%p332_p12), %s1978_s29, %s1555_s22  ;;  %s1559_s23 = sshll.u32 (!%p332_p12), %s1622_s13, 4  ;;  %s1560_s23 = int_to_ptr.vmem [resolvable:$false] %s1559_s23 }
  0x28   : > { %1428 = vmatprep.subr.bf16.mxu0 %v1427_v16  ;;  %v1433_v26 = vpack.c.bf16 %v382_v23, %v380_v22  ;;  %v387_v27 = vld [vmem:[%s340_s14 + $0x58] sm:$0xff]  ;;  %v384_v28 = vld [vmem:[%s340_s14 + $0x40] sm:$0xff]  ;;  %v386_v29 = vld [vmem:[%s340_s14 + $0x50] sm:$0xff]  ;;  %s1561_s24 = scalar_lea.vmem %s1560_s23, 64  ;;  %p1562_p2 = scmp.lt.s32.totalorder %s1978_s29, %s1560_s23 }
  0x29   : > { %1432 = vmatprep.subr.bf16.mxu1 %v1431_v20  ;;  %1430 = vmatpush1.bf16.msra.mxu0 %v1429_v21  ;;  %v1435_v30 = vpack.c.bf16 %v387_v27, %v385_v25  ;;  %v1437_v31 = vpack.c.bf16 %v386_v29, %v384_v28  ;;  %v1126_v8 = vld [vmem:[%s2027_s7 + $0x8] sm:$0xff]  ;;  %v1127_v14 = vld [vmem:[%s2027_s7 + $0x10] sm:$0xff]  ;;  %v1128_v16 = vld [vmem:[%s2027_s7 + $0x18] sm:$0xff]  ;;  %p1557_p0 = pnand %p1556_p13, %p1711_p6  ;;  %p1563_p3 = scmp.lt.s32.totalorder %s1561_s24, %s1555_s22 }
  0x2a   : > { %1434 = vmatpush1.bf16.msra.mxu1 %v1433_v26 }
  0x2b   : > { %1436 = vmatprep.subr.bf16.mxu0 %v1435_v30  ;;  %1022 = vperm.xlu0 %1483, %v1016_v42   ;;  %p1558_p1 = pneg %p1557_p0  ;;  %p1564_p4 = por %p1563_p3, %p1562_p2 }
  0x2c   : > { %1387 = vmatmul.mubr.msk.f32.vlgmr.msra.gmra.mrb[0].mxu0 %vm394_vm0, %v388_v24  ;;  %1027 = vperm.xlu1 %1484, %v1017_v43  }
  0x2d   : > { %1393 = vmatmul.mubr.msk.f32.vlgmr.msra.gmra.mrb[0].mxu1 %vm394_vm0, %v388_v24  ;;  %483 = vmatprep.mubr.f32.mxu0 %v1619_v12  ;;  %p1565_p5 = pnand %p1564_p4, %p1558_p1 }
  0x2e   : > { %584 = vmatprep.mubr.f32.mxu1 %v1619_v12  ;;  %1438 = vmatpush1.bf16.msra.mxu0 %v1437_v31 }
  0x2f   : > { %1032 = vperm.xlu0 %1483, %v1018_v52  }
  0x30   : > { %1388 = vmatmul.mubr.msk.f32.gmra.mrb[2].mxu0 %vm394_vm0, %v389_v32  ;;  %1037 = vperm.xlu1 %1484, %v1019_v55  }
  0x31   : > { %1394 = vmatmul.mubr.msk.f32.gmra.mrb[2].mxu1 %vm394_vm0, %v389_v32  ;;  %489 = vmatprep.mubr.f32.mxu0 %v1619_v12 }
  0x32   : > { %590 = vmatprep.mubr.f32.mxu1 %v1619_v12 }
  0x33   : > { %1131 = vperm.xlu0 %1483, %v1125_v4  }
  0x34   : > { %1389 = vmatmul.mubr.msk.f32.gmra.mrb[4].mxu0 %vm394_vm0, %v390_v33  ;;  %1136 = vperm.xlu1 %1484, %v1126_v8  }
  0x35   : > { %1395 = vmatmul.mubr.msk.f32.gmra.mrb[4].mxu1 %vm394_vm0, %v390_v33  ;;  %495 = vmatprep.mubr.f32.mxu0 %v1619_v12 }
  0x36   : > { %596 = vmatprep.mubr.f32.mxu1 %v1619_v12 }
  0x37   : > { %1141 = vperm.xlu0 %1483, %v1127_v14  }
  0x38   : > { %1390 = vmatmul.mubr.msk.f32.gmra.mrb[6].mxu0 %vm394_vm0, %v391_v34  ;;  %1146 = vperm.xlu1 %1484, %v1128_v16  }
  0x39   : > { %1396 = vmatmul.mubr.msk.f32.gmra.mrb[6].mxu1 %vm394_vm0, %v391_v34  ;;  %501 = vmatprep.mubr.f32.mxu0 %v1619_v12 }
  0x3a   : > { %602 = vmatprep.mubr.f32.mxu1 %v1619_v12 }
  0x3c   : > { %1391 = vmatmul.mubr.msk.f32.gmra.mrb[8].mxu0 %vm394_vm0, %v392_v35 }
  0x3d   : > { %1397 = vmatmul.mubr.msk.f32.gmra.mrb[8].mxu1 %vm394_vm0, %v392_v35  ;;  %507 = vmatprep.mubr.f32.mxu0 %v1619_v12 }
  0x3e   : > { %608 = vmatprep.mubr.f32.mxu1 %v1619_v12 }
  0x40   : > { %1392 = vmatmul.mubr.msk.f32.gmra.mrb[10].mxu0 %vm394_vm0, %v393_v36 }
  0x41   : > { %1398 = vmatmul.mubr.msk.f32.gmra.mrb[10].mxu1 %vm394_vm0, %v393_v36  ;;  %679 = vmatprep.mubr.f32.mxu0 %v1619_v12 }
  0x42   : > { %979 = vmatprep.mubr.bf16.mxu1 %v1620_v37 }
  0x44   : > { %1399 = vmatmul.mubr.msk.f32.vlgmr.msra.gmra.mrb[12].mxu0 %vm394_vm0, %v388_v24 }
  0x45   : > { %685 = vmatprep.mubr.f32.mxu0 %v1619_v12 }
  0x48   : > { %1400 = vmatmul.mubr.msk.f32.gmra.mrb[14].mxu0 %vm394_vm0, %v389_v32 }
  0x49   : > { %691 = vmatprep.mubr.f32.mxu0 %v1619_v12 }
  0x4c   : > { %1401 = vmatmul.mubr.msk.f32.gmra.mrb[16].mxu0 %vm394_vm0, %v390_v33 }
  0x4d   : > { %697 = vmatprep.mubr.f32.mxu0 %v1619_v12 }
  0x50   : > { %1402 = vmatmul.mubr.msk.f32.gmra.mrb[18].mxu0 %vm394_vm0, %v391_v34 }
  0x51   : > { %703 = vmatprep.mubr.f32.mxu0 %v1619_v12 }
  0x54   : > { %1403 = vmatmul.mubr.msk.f32.gmra.mrb[20].mxu0 %vm394_vm0, %v392_v35 }
  0x55   : > { %709 = vmatprep.mubr.f32.mxu0 %v1619_v12 }
  0x58   : > { %1404 = vmatmul.mubr.msk.f32.gmra.mrb[22].mxu0 %vm394_vm0, %v393_v36 }
  0x59   : > { %1197 = vmatprep.mubr.bf16.mxu0 %v1620_v37 }
  0xff   : > { %v479_v44 = vpop.f32.mrb[0].mxu0 }
 0x100   : > { %v726_v45 = vmul.f32 %v479_v44, %v479_v44  ;;  %v580_v46 = vpop.f32.mrb[0].mxu1  ;;  %v481_v47 = vpop.f32.mrb[1].mxu0 }
 0x101   : > { %v728_v48 = vmul.f32 %v580_v46, %v580_v46  ;;  %v727_v49 = vmul.f32 %v481_v47, %v481_v47  ;;  %v582_v50 = vpop.f32.mrb[1].mxu1 }
 0x102   : > { %v729_v51 = vmul.f32 %v582_v50, %v582_v50 }
 0x103   : > { %v730_v53 = vadd.f32 %v728_v48, %v726_v45  ;;  %v485_v54 = vpop.f32.mrb[2].mxu0 }
 0x104   : > { %v731_v56 = vadd.f32 %v729_v51, %v727_v49  ;;  %v716_v57 = vmul.f32 %v485_v54, %v479_v44  ;;  %v736_v58 = vmul.f32 %v485_v54, %v485_v54  ;;  %v586_v59 = vpop.f32.mrb[2].mxu1  ;;  %v487_v60 = vpop.f32.mrb[3].mxu0 }
 0x105   : > { %v718_v61 = vmul.f32 %v586_v59, %v580_v46  ;;  %v738_v62 = vmul.f32 %v586_v59, %v586_v59  ;;  %v717_v63 = vmul.f32 %v487_v60, %v481_v47  ;;  %v737_v0 = vmul.f32 %v487_v60, %v487_v60  ;;  %v588_v1 = vpop.f32.mrb[3].mxu1 }
 0x106   : > { %v719_v2 = vmul.f32 %v588_v1, %v582_v50  ;;  %v739_v3 = vmul.f32 %v588_v1, %v588_v1 }
 0x107   : > { %v720_v5 = vadd.f32 %v718_v61, %v716_v57  ;;  %v740_v6 = vadd.f32 %v738_v62, %v736_v58  ;;  %v1818_v7 = vpop.f32.mrb[4].mxu0 }
 0x108   : > { %v721_v9 = vadd.f32 %v719_v2, %v717_v63  ;;  %v741_v10 = vadd.f32 %v739_v3, %v737_v0  ;;  %v1823_v11 = vpop.f32.mrb[5].mxu0  ;;  %v1825_v12 = vpop.f32.mrb[4].mxu1 }
 0x109   : > { %v1827_v13 = vpop.f32.mrb[5].mxu1 }
 0x10b   : > { %v1832_v15 = vpop.f32.mrb[6].mxu0 }
 0x10c   : > { %v758_v17 = vmul.f32 %v1832_v15, %v1832_v15  ;;  %v1839_v18 = vpop.f32.mrb[6].mxu1  ;;  %v1841_v19 = vpop.f32.mrb[7].mxu0 }
 0x10d   : > { %v760_v20 = vmul.f32 %v1839_v18, %v1839_v18  ;;  %v759_v21 = vmul.f32 %v1841_v19, %v1841_v19  ;;  %v1847_v22 = vpop.f32.mrb[7].mxu1 }
 0x10e   : > { %v761_v23 = vmul.f32 %v1847_v22, %v1847_v22 }
 0x10f   : > { %v762_v24 = vadd.f32 %v760_v20, %v758_v17  ;;  %v1851_v25 = vpop.f32.mrb[8].mxu0 }
 0x110   : > { %v763_v26 = vadd.f32 %v761_v23, %v759_v21  ;;  %v1853_v27 = vpop.f32.mrb[9].mxu0  ;;  %v1855_v28 = vpop.f32.mrb[8].mxu1 }
 0x111   : > { %v1857_v29 = vpop.f32.mrb[9].mxu1 }
 0x113   : > { %v509_v30 = vpop.f32.mrb[10].mxu0 }
 0x114   : > { %v874_v31 = vmul.f32 %v509_v30, %v509_v30  ;;  %v610_v32 = vpop.f32.mrb[10].mxu1  ;;  %v511_v33 = vpop.f32.mrb[11].mxu0 }
 0x115   : > { %v876_v34 = vmul.f32 %v610_v32, %v610_v32  ;;  %v875_v35 = vmul.f32 %v511_v33, %v511_v33  ;;  %v612_v36 = vpop.f32.mrb[11].mxu1 }
 0x116   : > { %v877_v38 = vmul.f32 %v612_v36, %v612_v36 }
 0x117   : > { %v878_v39 = vadd.f32 %v876_v34, %v874_v31  ;;  %v681_v40 = vpop.f32.mrb[12].mxu0 }
 0x118   : > { %v879_v41 = vadd.f32 %v877_v38, %v875_v35  ;;  %v732_v42 = vmul.f32 %v681_v40, %v681_v40  ;;  %v683_v43 = vpop.f32.mrb[13].mxu0 }
 0x119   : > { %v733_v44 = vmul.f32 %v683_v43, %v683_v43 }
 0x11a   : > { %v734_v45 = vadd.f32 %v732_v42, %v730_v53 }
 0x11b   : > { %v735_v46 = vadd.f32 %v733_v44, %v731_v56  ;;  %v687_v47 = vpop.f32.mrb[14].mxu0 }
 0x11c   : > { %v722_v48 = vmul.f32 %v687_v47, %v681_v40  ;;  %v742_v49 = vmul.f32 %v687_v47, %v687_v47  ;;  %v689_v50 = vpop.f32.mrb[15].mxu0 }
 0x11d   : > { %v723_v51 = vmul.f32 %v689_v50, %v683_v43  ;;  %v743_v52 = vmul.f32 %v689_v50, %v689_v50 }
 0x11e   : > { %v724_v54 = vadd.f32 %v722_v48, %v720_v5  ;;  %v744_v55 = vadd.f32 %v742_v49, %v740_v6 }
 0x11f   : > { %v725_v57 = vadd.f32 %v723_v51, %v721_v9  ;;  %v745_v58 = vadd.f32 %v743_v52, %v741_v10  ;;  %v1859_v59 = vpop.f32.mrb[16].mxu0 }
 0x120   : > { %v746_v60 = vmul.f32 %v744_v55, %v734_v45  ;;  %v1861_v61 = vpop.f32.mrb[17].mxu0 }
 0x121   : > { %v747_v62 = vmul.f32 %v745_v58, %v735_v46 }
 0x122   : > { %v748_v63 = vmax.f32 %v746_v60, 1e-12 }
 0x123   : > { %v749_v0 = vmax.f32 %v747_v62, 1e-12  ;;  %v699_v53 = vpop.f32.mrb[18].mxu0 }
 0x124   : > { %1491 = vrsqrt.f32 %v748_v63  ;;  %v764_v56 = vmul.f32 %v699_v53, %v699_v53  ;;  %v701_v1 = vpop.f32.mrb[19].mxu0 }
 0x125   : > { %1493 = vrsqrt.f32 %v749_v0  ;;  %v765_v2 = vmul.f32 %v701_v1, %v701_v1 }
 0x126   : > { %v766_v3 = vadd.f32 %v764_v56, %v762_v24 }
 0x127   : > { %v767_v4 = vadd.f32 %v765_v2, %v763_v26  ;;  %v705_v5 = vpop.f32.mrb[20].mxu0 }
 0x128   : > { %v768_v6 = vmax.f32 %v766_v3, 1e-12  ;;  %v1863_v8 = vpop.f32.mrb[21].mxu0 }
 0x129   : > { %v769_v9 = vmax.f32 %v767_v4, 1e-12 }
 0x12a   : > { %1495 = vrsqrt.f32 %v768_v6 }
 0x12b   : > { %1497 = vrsqrt.f32 %v769_v9  ;;  %v711_v10 = vpop.f32.mrb[22].mxu0 }
 0x12c   : > { %v880_v14 = vmul.f32 %v711_v10, %v711_v10  ;;  %v713_v16 = vpop.f32.mrb[23].mxu0 }
 0x12d   : > { %v881_v17 = vmul.f32 %v713_v16, %v713_v16 }
 0x12e   : > { %v1492_v20 = vpop.eup %1491  ;;  %v1865_v21 = vadd.f32 %v880_v14, %v878_v39 }
 0x12f   : > { %v1494_v23 = vpop.eup %1493  ;;  %v1867_v30 = vmul.f32 %v1492_v20, %v724_v54  ;;  %v1869_v31 = vadd.f32 %v881_v17, %v879_v41 }
 0x130   : > { %v1871_v24 = vmul.f32 %v1494_v23, %v725_v57  ;;  %1499 = vrsqrt.f32 %v1865_v21  ;;  %vm886_vm1 = vcmp.eq.f32.partialorder %v1865_v21, inf  ;;  %vm888_vm2 = vcmp.eq.f32.partialorder %v1865_v21, 0.0 }
 0x131   : > { %1501 = vrsqrt.f32 %v1869_v31  ;;  %vm893_vm3 = vcmp.eq.f32.partialorder %v1869_v31, inf  ;;  %vm895_vm4 = vcmp.eq.f32.partialorder %v1869_v31, 0.0 }
 0x134   : > { %v1496_v26 = vpop.eup %1495 }
 0x135   : > { %v1498_v32 = vpop.eup %1497  ;;  %v776_v33 = vmul.f32 %v1496_v26, %v699_v53  ;;  %v772_v34 = vmul.f32 %v1496_v26, %v1832_v15  ;;  %v774_v35 = vmul.f32 %v1496_v26, %v1839_v18 }
 0x136   : > { %v1875_v36 = vmul.f32 %v1498_v32, %v701_v1  ;;  %v1878_v38 = vmul.f32 %v1498_v32, %v1841_v19  ;;  %v1881_v39 = vmul.f32 %v1498_v32, %v1847_v22 }
 0x137   : > { %v778_v40 = vmul.f32 %v772_v34, %v1818_v7  ;;  %v780_v41 = vmul.f32 %v774_v35, %v1825_v12  ;;  %v784_v42 = vmul.f32 %v776_v33, %v1859_v59  ;;  %v800_v43 = vmul.f32 %v772_v34, %v1851_v25 }
 0x138   : > { %v802_v15 = vmul.f32 %v774_v35, %v1855_v28  ;;  %v806_v44 = vmul.f32 %v776_v33, %v705_v5  ;;  %v779_v18 = vmul.f32 %v1878_v38, %v1823_v11  ;;  %v781_v19 = vmul.f32 %v1881_v39, %v1827_v13 }
 0x139   : > { %v782_v45 = vadd.f32 %v780_v41, %v778_v40  ;;  %v785_v22 = vmul.f32 %v1875_v36, %v1861_v61  ;;  %v801_v46 = vmul.f32 %v1878_v38, %v1853_v27  ;;  %v803_v47 = vmul.f32 %v1881_v39, %v1857_v29 }
 0x13a   : > { %v804_v48 = vadd.f32 %v802_v15, %v800_v43  ;;  %v783_v49 = vadd.f32 %v781_v19, %v779_v18  ;;  %v807_v50 = vmul.f32 %v1875_v36, %v1863_v8 }
 0x13b   : > { %v786_v51 = vadd.f32 %v784_v42, %v782_v45  ;;  %v805_v52 = vadd.f32 %v803_v47, %v801_v46 }
 0x13c   : > { %v808_v54 = vadd.f32 %v806_v44, %v804_v48  ;;  %v787_v55 = vadd.f32 %v785_v22, %v783_v49 }
 0x13d   : > { %v788_v57 = vmul.f32 %v786_v51, %v772_v34  ;;  %v790_v58 = vmul.f32 %v786_v51, %v774_v35  ;;  %v792_v60 = vmul.f32 %v786_v51, %v776_v33  ;;  %v809_v62 = vadd.f32 %v807_v50, %v805_v52 }
 0x13e   : > { %v810_v63 = vmul.f32 %v808_v54, %v772_v34  ;;  %v812_v0 = vmul.f32 %v808_v54, %v774_v35  ;;  %v814_v53 = vmul.f32 %v808_v54, %v776_v33  ;;  %v789_v56 = vmul.f32 %v787_v55, %v1878_v38 }
 0x13f   : > { %v794_v1 = vsub.f32 %v1818_v7, %v788_v57  ;;  %v796_v2 = vsub.f32 %v1825_v12, %v790_v58  ;;  %v798_v3 = vsub.f32 %v1859_v59, %v792_v60  ;;  %v791_v4 = vmul.f32 %v787_v55, %v1881_v39 }
 0x140   : > { %v816_v6 = vsub.f32 %v1851_v25, %v810_v63  ;;  %v818_v9 = vsub.f32 %v1855_v28, %v812_v0  ;;  %v820_v10 = vsub.f32 %v705_v5, %v814_v53  ;;  %v793_v14 = vmul.f32 %v787_v55, %v1875_v36 }
 0x141   : > { %v832_v16 = vmul.f32 %v798_v3, %v774_v35  ;;  %v834_v17 = vmul.f32 %v796_v2, %v776_v33  ;;  %v838_v20 = vmul.f32 %v794_v1, %v776_v33  ;;  %v840_v23 = vmul.f32 %v798_v3, %v772_v34 }
 0x142   : > { %v822_v26 = vmul.f32 %v816_v6, %v794_v1  ;;  %v824_v32 = vmul.f32 %v818_v9, %v796_v2  ;;  %v828_v7 = vmul.f32 %v820_v10, %v798_v3  ;;  %v844_v40 = vmul.f32 %v796_v2, %v772_v34  ;;  %v1500_v3 = vpop.eup %1499 }
 0x143   : > { %v836_v12 = vsub.f32 %v832_v16, %v834_v17  ;;  %v842_v41 = vsub.f32 %v838_v20, %v840_v23  ;;  %v846_v59 = vmul.f32 %v794_v1, %v774_v35  ;;  %v795_v42 = vsub.f32 %v1823_v11, %v789_v56 }
 0x144   : > { %v826_v43 = vadd.f32 %v824_v32, %v822_v26  ;;  %v797_v25 = vsub.f32 %v1827_v13, %v791_v4  ;;  %v799_v28 = vsub.f32 %v1861_v61, %v793_v14  ;;  %v811_v5 = vmul.f32 %v809_v62, %v1878_v38 }
 0x145   : > { %v848_v15 = vsub.f32 %v844_v40, %v846_v59  ;;  %v850_v44 = vmul.f32 %v836_v12, %v816_v6  ;;  %v852_v33 = vmul.f32 %v842_v41, %v818_v9  ;;  %v813_v18 = vmul.f32 %v809_v62, %v1881_v39 }
 0x146   : > { %v830_v19 = vadd.f32 %v828_v7, %v826_v43  ;;  %v815_v34 = vmul.f32 %v809_v62, %v1875_v36  ;;  %v817_v45 = vsub.f32 %v1853_v27, %v811_v5  ;;  %v833_v35 = vmul.f32 %v799_v28, %v1881_v39 }
 0x147   : > { %v854_v11 = vadd.f32 %v852_v33, %v850_v44  ;;  %v856_v22 = vmul.f32 %v848_v15, %v820_v10  ;;  %v819_v13 = vsub.f32 %v1857_v29, %v813_v18  ;;  %v835_v61 = vmul.f32 %v797_v25, %v1875_v36  ;;  %v1502_v10 = vpop.eup %1501  ;;  %v1485_v15 = vld [vmem:[%s2022_s2] sm:$0xff]  }
 0x148   : > { %v821_v46 = vsub.f32 %v1863_v8, %v815_v34  ;;  %v823_v47 = vmul.f32 %v817_v45, %v795_v42  ;;  %v839_v48 = vmul.f32 %v795_v42, %v1875_v36  ;;  %v841_v27 = vmul.f32 %v799_v28, %v1878_v38 }
 0x149   : > { %v858_v49 = vadd.f32 %v856_v22, %v854_v11  ;;  %v825_v50 = vmul.f32 %v819_v13, %v797_v25  ;;  %v837_v51 = vsub.f32 %v833_v35, %v835_v61  ;;  %v860_v52 = vmul.f32 %v830_v19, %v830_v19  ;;  %v923_v22 = vpop.permute.xlu1 %922 }
 0x14a   : > { %v829_v54 = vmul.f32 %v821_v46, %v799_v28  ;;  %v845_v55 = vmul.f32 %v797_v25, %v1878_v38  ;;  %v847_v29 = vmul.f32 %v795_v42, %v1881_v39  ;;  %v843_v60 = vsub.f32 %v839_v48, %v841_v27 }
 0x14b   : > { %v862_v57 = vmul.f32 %v858_v49, %v858_v49  ;;  %v827_v58 = vadd.f32 %v825_v50, %v823_v47  ;;  %v851_v8 = vmul.f32 %v837_v51, %v817_v45  ;;  %v885_v39 = vmul.f32 %v1500_v3, %v1865_v21 }
 0x14c   : > { %v849_v62 = vsub.f32 %v845_v55, %v847_v29  ;;  %v853_v0 = vmul.f32 %v843_v60, %v819_v13  ;;  %v889_v17 = vand.u32 2147483648, %v1865_v21  ;;  %v1405_v20 = vclamps-f32 %v1867_v30, 1.0 }
 0x14d   : > { %v864_v63 = vadd.f32 %v862_v57, %v860_v52  ;;  %v831_v36 = vadd.f32 %v829_v54, %v827_v58  ;;  %v887_v14 = vsel %vm886_vm1, %v1865_v21, %v885_v39  ;;  %v892_v40 = vmul.f32 %v1502_v10, %v1869_v31  ;;  %v928_v48 = vpop.permute.xlu1 %927 }
 0x14e   : > { %v857_v53 = vmul.f32 %v849_v62, %v821_v46  ;;  %v855_v1 = vadd.f32 %v853_v0, %v851_v8  ;;  %v890_v32 = vsel %vm888_vm2, %v889_v17, %v887_v14  ;;  %v896_v42 = vand.u32 2147483648, %v1869_v31 }
 0x14f   : > { %v866_v56 = vmax.f32 %v864_v63, 1e-12  ;;  %v861_v4 = vmul.f32 %v831_v36, %v831_v36  ;;  %v894_v41 = vsel %vm893_vm3, %v1869_v31, %v892_v40  ;;  %v1406_v43 = vclamps-f32 %v1871_v24, 1.0  ;;  %v1486_v31 = vld [vmem:[%s2022_s2 + $0x8] sm:$0xff]   ;;  %v913_v24 = vpop.permute.xlu0 %912 }
 0x150   : > { %v859_v2 = vadd.f32 %v857_v53, %v855_v1  ;;  %v897_v28 = vsel %vm895_vm4, %v896_v42, %v894_v41  ;;  %v1488_v1 = vld [vmem:[%s2024_s4 + $0x8] sm:$0xff]  }
 0x151   : > { %1503 = vrsqrt.f32 %v866_v56  ;;  %v1487_v56 = vld [vmem:[%s2024_s4] sm:$0xff]  }
 0x152   : > { %v863_v38 = vmul.f32 %v859_v2, %v859_v2 }
 0x154   : > { %v865_v6 = vadd.f32 %v863_v38, %v861_v4 }
 0x156   : > { %v867_v9 = vmax.f32 %v865_v6, 1e-12  ;;  %v1028_v6 = vpop.permute.xlu1 %1027 }
 0x158   : > { %1505 = vrsqrt.f32 %v867_v9 }
 0x15b   : > { %v1504_v16 = vpop.eup %1503 }
 0x15c   : > { %v870_v23 = vmul.f32 %v1504_v16, %v830_v19  ;;  %v872_v26 = vmul.f32 %v1504_v16, %v858_v49  ;;  %v918_v19 = vpop.permute.xlu0 %917 }
 0x15e   : > { %v902_v7 = vpack.c.bf16 %v870_v23, %v1405_v20  ;;  %v904_v12 = vpack.c.bf16 %v890_v32, %v872_v26  ;;  %v1038_v32 = vpop.permute.xlu1 %1037 }
 0x162   : > { %v1506_v59 = vpop.eup %1505 }
 0x163   : > { %v871_v25 = vmul.f32 %v1506_v59, %v831_v36  ;;  %v873_v30 = vmul.f32 %v1506_v59, %v859_v2  ;;  %v1023_v2 = vpop.permute.xlu0 %1022 }
 0x165   : > { %v903_v21 = vpack.c.bf16 %v871_v25, %v1406_v43  ;;  %v905_v5 = vpack.c.bf16 %v897_v28, %v873_v30 }
 0x167   : > { %947 = vmatprep.subr.bf16.mxu1 %v903_v21  ;;  %v1033_v17 = vpop.permute.xlu0 %1032 }
 0x168   : > { %948 = vmatpush1.bf16.msra.mxu1 %v902_v7 }
 0x169   : > { %949 = vmatprep.subr.bf16.mxu1 %v905_v5 }
 0x16c   : > { %950 = vmatpush1.bf16.msra.mxu1 %v904_v12 }
 0x16f   : > { %1409 = vmatmul.mubr.msk.bf16.vlgmr.msra.gmra.mrb[12].mxu1 %vm940_vm5, %v1485_v15 }
 0x170   : > { %989 = vmatprep.mubr.bf16.mxu1 %v1620_v37 }
 0x177   : > { %1410 = vmatmul.mubr.msk.bf16.gmra.mrb[16].mxu1 %vm940_vm5, %v1486_v31 }
 0x178   : > { %1088 = vmatprep.mubr.bf16.mxu1 %v1620_v37 }
 0x242   : > { %v981_v44 = vpop.f32.mrb[12].mxu1 }
 0x243   : > { %v982_v33 = vadd.f32 %v981_v44, %v913_v24  ;;  %v983_v18 = vpop.f32.mrb[13].mxu1 }
 0x244   : > { %v984_v34 = vadd.f32 %v983_v18, %v913_v24  ;;  %v985_v45 = vpop.f32.mrb[14].mxu1  ;;  %v1489_v18 = vld [vmem:[%s2026_s6] sm:$0xff]  }
 0x245   : > { %1507 = vtanh.f32 %v982_v33  ;;  %v986_v35 = vadd.f32 %v985_v45, %v918_v19  ;;  %v987_v11 = vpop.f32.mrb[15].mxu1 }
 0x246   : > { %1509 = vtanh.f32 %v984_v34  ;;  %v988_v13 = vadd.f32 %v987_v11, %v918_v19  ;;  %v1490_v19 = vld [vmem:[%s2026_s6 + $0x8] sm:$0xff]   ;;  %v1132_v34 = vpop.permute.xlu0 %1131 }
 0x247   : > { %1511 = vtanh.f32 %v986_v35 }
 0x248   : > { %1513 = vtanh.f32 %v988_v13 }
 0x24a   : > { %v991_v61 = vpop.f32.mrb[16].mxu1 }
 0x24b   : > { %v992_v46 = vadd.f32 %v991_v61, %v923_v22  ;;  %v993_v47 = vpop.f32.mrb[17].mxu1 }
 0x24c   : > { %v994_v49 = vadd.f32 %v993_v47, %v923_v22  ;;  %v995_v50 = vpop.f32.mrb[18].mxu1  ;;  %v1137_v22 = vpop.permute.xlu1 %1136 }
 0x24d   : > { %1515 = vtanh.f32 %v992_v46  ;;  %v996_v51 = vadd.f32 %v995_v50, %v928_v48  ;;  %v997_v27 = vpop.f32.mrb[19].mxu1 }
 0x24e   : > { %1517 = vtanh.f32 %v994_v49  ;;  %v998_v52 = vadd.f32 %v997_v27, %v928_v48 }
 0x24f   : > { %v1508_v54 = vpop.eup %1507  ;;  %1519 = vtanh.f32 %v996_v51 }
 0x250   : > { %v1510_v55 = vpop.eup %1509  ;;  %1521 = vtanh.f32 %v998_v52  ;;  %v1147_v27 = vpop.permute.xlu1 %1146 }
 0x251   : > { %v1512_v29 = vpop.eup %1511 }
 0x252   : > { %v1514_v57 = vpop.eup %1513  ;;  %v1012_v58 = vpack.c.bf16 %v1512_v29, %v1508_v54 }
 0x253   : > { %v1013_v60 = vpack.c.bf16 %v1514_v57, %v1510_v55 }
 0x255   : > { %1056 = vmatprep.subr.bf16.mxu1 %v1013_v60 }
 0x256   : > { %1057 = vmatpush1.bf16.msra.mxu1 %v1012_v58 }
 0x257   : > { %v1516_v8 = vpop.eup %1515 }
 0x258   : > { %v1518_v62 = vpop.eup %1517 }
 0x259   : > { %v1520_v63 = vpop.eup %1519 }
 0x25a   : > { %v1522_v36 = vpop.eup %1521  ;;  %v1014_v0 = vpack.c.bf16 %v1520_v63, %v1516_v8 }
 0x25b   : > { %v1015_v53 = vpack.c.bf16 %v1522_v36, %v1518_v62 }
 0x25d   : > { %1058 = vmatprep.subr.bf16.mxu1 %v1015_v53 }
 0x25e   : > { %1059 = vmatpush1.bf16.msra.mxu1 %v1014_v0 }
 0x261   : > { %1413 = vmatmul.mubr.msk.bf16.vlgmr.msra.gmra.mrb[20].mxu1 %vm940_vm5, %v1487_v56 }
 0x262   : > { %1098 = vmatprep.mubr.bf16.mxu1 %v1620_v37 }
 0x269   : > { %1414 = vmatmul.mubr.msk.bf16.gmra.mrb[24].mxu1 %vm940_vm5, %v1488_v1 }
 0x26a   : > { %1266 = vmatprep.mubr.bf16.mxu1 %v1620_v37 }
 0x334   : > { %v1090_v3 = vpop.f32.mrb[20].mxu1 }
 0x335   : > { %v1091_v4 = vadd.f32 %v1090_v3, %v1023_v2  ;;  %v1092_v38 = vpop.f32.mrb[21].mxu1 }
 0x336   : > { %v1093_v39 = vadd.f32 %v1092_v38, %v1023_v2  ;;  %v1094_v9 = vpop.f32.mrb[22].mxu1  ;;  %v1621_v38 = vmov 1966171168  }
 0x337   : > { %1523 = vtanh.f32 %v1091_v4  ;;  %v1095_v10 = vadd.f32 %v1094_v9, %v1028_v6  ;;  %v1096_v14 = vpop.f32.mrb[23].mxu1  ;;  %v1226_v4 = vld [vmem:[%s2028_s8] sm:$0x1] }
 0x338   : > { %1525 = vtanh.f32 %v1093_v39  ;;  %v1097_v16 = vadd.f32 %v1096_v14, %v1028_v6  ;;  %v1281_v6 = vunpack.c.l.s4 %v1621_v38  ;;  %v1283_v39 = vlaneseq }
 0x339   : > { %1527 = vtanh.f32 %v1095_v10 }
 0x33a   : > { %1529 = vtanh.f32 %v1097_v16  ;;  %v1282_v9 = vunpack.c.0.s8 %v1281_v6  ;;  %v1284_v10 = vshrl.u32 %v1283_v39, 7  ;;  %vm1297_vm6 = vcmp.lt.s32.totalorder %v1283_v39, 256 }
 0x33c   : > { %v1100_v20 = vpop.f32.mrb[24].mxu1 }
 0x33d   : > { %v1101_v23 = vadd.f32 %v1100_v20, %v1033_v17  ;;  %v1102_v26 = vpop.f32.mrb[25].mxu1 }
 0x33e   : > { %v1103_v7 = vadd.f32 %v1102_v26, %v1033_v17  ;;  %v1104_v40 = vpop.f32.mrb[26].mxu1 }
 0x33f   : > { %1531 = vtanh.f32 %v1101_v23  ;;  %v1105_v12 = vadd.f32 %v1104_v40, %v1038_v32  ;;  %v1106_v41 = vpop.f32.mrb[27].mxu1  ;;  %v1285_v23 = vsub.s32 %v1282_v9, %v1284_v10 }
 0x340   : > { %1533 = vtanh.f32 %v1103_v7  ;;  %v1107_v59 = vadd.f32 %v1106_v41, %v1038_v32 }
 0x341   : > { %v1524_v42 = vpop.eup %1523  ;;  %1535 = vtanh.f32 %v1105_v12 }
 0x342   : > { %v1526_v43 = vpop.eup %1525  ;;  %1537 = vtanh.f32 %v1107_v59 }
 0x343   : > { %v1528_v25 = vpop.eup %1527 }
 0x344   : > { %v1530_v30 = vpop.eup %1529  ;;  %v1121_v28 = vpack.c.bf16 %v1528_v25, %v1524_v42 }
 0x345   : > { %v1122_v21 = vpack.c.bf16 %v1530_v30, %v1526_v43 }
 0x347   : > { %1165 = vmatprep.subr.bf16.mxu0 %v1122_v21 }
 0x348   : > { %1166 = vmatpush1.bf16.msra.mxu0 %v1121_v28 }
 0x349   : > { %v1532_v5 = vpop.eup %1531 }
 0x34a   : > { %v1534_v15 = vpop.eup %1533 }
 0x34b   : > { %v1536_v31 = vpop.eup %1535 }
 0x34c   : > { %v1538_v24 = vpop.eup %1537  ;;  %v1123_v44 = vpack.c.bf16 %v1536_v31, %v1532_v5 }
 0x34d   : > { %v1124_v33 = vpack.c.bf16 %v1538_v24, %v1534_v15 }
 0x34f   : > { %1167 = vmatprep.subr.bf16.mxu0 %v1124_v33 }
 0x350   : > { %1168 = vmatpush1.bf16.msra.mxu0 %v1123_v44 }
 0x353   : > { %1417 = vmatmul.mubr.msk.bf16.vlgmr.msra.gmra.mrb[24].mxu0 %vm940_vm5, %v1489_v18 }
 0x354   : > { %1207 = vmatprep.mubr.bf16.mxu0 %v1620_v37  ;;  %v1142_v37 = vpop.permute.xlu0 %1141 }
 0x35b   : > { %1418 = vmatmul.mubr.msk.bf16.gmra.mrb[28].mxu0 %vm940_vm5, %v1490_v19 }
 0x426   : > { %v1199_v45 = vpop.f32.mrb[24].mxu0 }
 0x427   : > { %v1200_v35 = vadd.f32 %v1199_v45, %v1132_v34  ;;  %v1201_v11 = vpop.f32.mrb[25].mxu0 }
 0x428   : > { %v1202_v13 = vadd.f32 %v1201_v11, %v1132_v34  ;;  %v1203_v61 = vpop.f32.mrb[26].mxu0 }
 0x429   : > { %1539 = vtanh.f32 %v1200_v35  ;;  %v1204_v46 = vadd.f32 %v1203_v61, %v1137_v22  ;;  %v1205_v47 = vpop.f32.mrb[27].mxu0 }
 0x42a   : > { %1541 = vtanh.f32 %v1202_v13  ;;  %v1206_v48 = vadd.f32 %v1205_v47, %v1137_v22 }
 0x42b   : > { %1543 = vtanh.f32 %v1204_v46 }
 0x42c   : > { %1545 = vtanh.f32 %v1206_v48 }
 0x42e   : > { %v1209_v49 = vpop.f32.mrb[28].mxu0 }
 0x42f   : > { %v1210_v50 = vadd.f32 %v1209_v49, %v1142_v37  ;;  %v1211_v51 = vpop.f32.mrb[29].mxu0 }
 0x430   : > { %v1212_v52 = vadd.f32 %v1211_v51, %v1142_v37  ;;  %v1213_v54 = vpop.f32.mrb[30].mxu0 }
 0x431   : > { %1547 = vtanh.f32 %v1210_v50  ;;  %v1214_v55 = vadd.f32 %v1213_v54, %v1147_v27  ;;  %v1215_v29 = vpop.f32.mrb[31].mxu0 }
 0x432   : > { %1549 = vtanh.f32 %v1212_v52  ;;  %v1216_v57 = vadd.f32 %v1215_v29, %v1147_v27 }
 0x433   : > { %v1540_v58 = vpop.eup %1539  ;;  %1551 = vtanh.f32 %v1214_v55 }
 0x434   : > { %v1542_v60 = vpop.eup %1541  ;;  %1553 = vtanh.f32 %v1216_v57 }
 0x435   : > { %v1544_v8 = vpop.eup %1543 }
 0x436   : > { %v1546_v62 = vpop.eup %1545  ;;  %v1227_v63 = vpack.c.bf16 %v1544_v8, %v1540_v58 }
 0x437   : > { %v1228_v36 = vpack.c.bf16 %v1546_v62, %v1542_v60 }
 0x439   : > { %1234 = vmatprep.subr.bf16.mxu1 %v1228_v36 }
 0x43a   : > { %1235 = vmatpush1.bf16.msra.mxu1 %v1227_v63 }
 0x43b   : > { %v1548_v0 = vpop.eup %1547 }
 0x43c   : > { %v1550_v53 = vpop.eup %1549 }
 0x43d   : > { %v1552_v56 = vpop.eup %1551 }
 0x43e   : > { %v1554_v1 = vpop.eup %1553  ;;  %v1229_v2 = vpack.c.bf16 %v1552_v56, %v1548_v0 }
 0x43f   : > { %v1230_v3 = vpack.c.bf16 %v1554_v1, %v1550_v53 }
 0x441   : > { %1236 = vmatprep.subr.bf16.mxu1 %v1230_v3 }
 0x442   : > { %1237 = vmatpush1.bf16.msra.mxu1 %v1229_v2 }
 0x445   : > { %1419 = vmatmul.mubr.msk.bf16.vlgmr.msra.gmra.mrb[28].mxu1 %vm940_vm5, %v1226_v4 }
 0x518   : > { %v1268_v14 = vpop.f32.mrb[28].mxu1 }
 0x519   : > { %v1275_v16 = vmul.f32 2.4943388, %v1268_v14  ;;  %v1270_v17 = vpop.f32.mrb[29].mxu1 }
 0x51a   : > { %v1276_v20 = vmul.f32 2.4943388, %v1270_v17  ;;  %v1272_v26 = vpop.f32.mrb[30].mxu1 }
 0x51b   : > { %v1273_v32 = vpop.f32.mrb[31].mxu1 }
 0x51c   : > { %v1279_v7 = vcombine.low %v1275_v16, %v1276_v20 }
 0x51e   : > { %v1286_v40 = vrot.slane %v1279_v7, %v1285_v23 }
 0x520   : > { %v1293_v12 = vrot.slane %v1286_v40, %v1285_v23 }
 0x522   : > { %1299 = vst.msk [vmem:[%s372_s27] sm:$0x3] %vm1297_vm6, %v1293_v12 }
 0x523   : > { %1568 = shalt.err (!%p1565_p5)
}
 0x524   : > { %s1569_s28 = scalar_lea.hbm %s1976_s17, 32  ;;  %s1573_s27 = scalar_lea.hbm %s2029_s9, 64 }
 0x525   : > { %p1570_p7 = scmp.ne.s32.totalorder %s1976_s17, %s1569_s28  ;;  %p1574_p12 = scmp.lt.u32.totalorder %s1976_s17, %s2029_s9 }
 0x526   : > { %p1575_p13 = scmp.lt.u32.totalorder %s1573_s27, %s1569_s28  ;;  %p1577_p1 = scmp.lt.u32.totalorder %s1569_s28, %s1976_s17 }
 0x527   : > { %p1571_p10 = pnand %p1570_p7, %p1711_p6 }
 0x528   : > { %p1576_p0 = por %p1575_p13, %p1574_p12 }
 0x529   : > { %p1572_p11 = pneg %p1571_p10 }
 0x52a   : > { %p1578_p2 = por %p1577_p1, %p1576_p0 }
 0x52c   : > { %p1579_p3 = pnand %p1578_p2, %p1572_p11 }
 0x52e   : > { %1582 = shalt.err (!%p1579_p3)
}
 0x52f   : > { %1441 = dma.vmem_to_hbm [thread:$0]  (%p1711_p6), %s1978_s29, 32, %s1976_s17, %s1301_s21  }
 0x530 PF: > { %s1327_s22 = sand.u32 1, %s1605_s30   ;;  %p1444_p4 = pnand %p1382_p9, %p1715_p8 }
 0x531   : > { %s1328_s13 = scalar_lea.sflag [#allocation4], %s1327_s22 }
 0x532   : > { %1600 = dma.done.wait (!%p1444_p4), %s1328_s13, 32  }
 0x533   : > { %1602 = vsyncadd (!%p1444_p4), %s1328_s13, 4294967264  ;;  %p19_p5 = scmp.ge.s32.totalorder %s1696_s15, 4   ;;  %s2032_s30 = smov %s1609_s10 }
 0x534   : > { %s2033_s10 = smov %s1613_s11  ;;  %s2034_s11 = smov %s1709_s18 }
 0x535   : > { %s2035_s12 = smov %s1696_s15  ;;  %21 = sbr.rel (!%p19_p5) target bundleno = 3 (0x3), region = 119 }
 0x53c   :  { %1333 = vsyncpa [#allocation4], 1 }
 0x53d   :  { %1335 = vsyncpa [#allocation4 + $0x1], 1 }

</bundles_post_ra>
